<compile_context>
chip_gen: v6e
topology: v6e:2x2x1
jax: 0.10.0
libtpu: 0.0.40
codegen_flags: <defaults>
</compile_context>

<pallas_src>
import functools

import jax
import jax.numpy as jnp
from jax.experimental import pallas as pl
from jax.experimental.pallas import tpu as pltpu


_LANE_W = 1024      # lane-dense width (8 vregs wide -> unmasked full-lane stores)
_BLOCK_ROWS = 256   # 256 x 1024 x 4 B = 1 MiB f32 block (HBM-roofline sweet spot)


def _dropout_kernel(x_ref, bits_ref, o_ref, *, threshold: int, inv_keep: float):
    # Keep an element iff its random uint32 < keep_prob * 2**32.
    keep = bits_ref[...] < jnp.uint32(threshold)
    # Do the scale/select in f32 and cast once at the store.
    x = x_ref[...].astype(jnp.float32)
    o_ref[...] = jnp.where(
        keep, x * jnp.float32(inv_keep), jnp.float32(0.0)
    ).astype(o_ref.dtype)


def custom_dropout(x, p: float = 0.5, *, key=None, seed: int = 0, training: bool = True):
    """Pallas implementation of CustomDropout.forward."""
    if not training or p == 0.0:
        return x
    if p >= 1.0:
        # Everything dropped; avoid 1/(1-p) = inf and 0*inf = NaN.
        return jnp.zeros_like(x)

    keep_prob = 1.0 - float(p)
    inv_keep = 1.0 / keep_prob
    threshold = min(int(round(keep_prob * 2.0 ** 32)), 2 ** 32 - 1)

    orig_shape = x.shape
    n = x.size

    # Lane-dense 2-D slab, padded so the grid tiles it exactly (no partial blocks).
    rows = pl.cdiv(n, _LANE_W)
    tm = _BLOCK_ROWS if rows >= _BLOCK_ROWS else max(16, ((rows + 15) // 16) * 16)
    rows_p = pl.cdiv(rows, tm) * tm
    padded_n = rows_p * _LANE_W

    x_flat = jnp.ravel(x)
    if padded_n != n:
        x_flat = jnp.pad(x_flat, (0, padded_n - n))
    x2d = x_flat.reshape(rows_p, _LANE_W)

    # Fresh, uncorrelated random bits for the whole (padded) slab.
    if key is None:
        key = jax.random.PRNGKey(seed)
    bits = jax.random.bits(key, (rows_p, _LANE_W), dtype=jnp.uint32)

    grid = (rows_p // tm,)

    compiler_params = None
    if jax.default_backend() == "tpu":
        # Elementwise + per-tile independent randomness -> safe to shard the
        # grid across both TensorCores on v7x megacore.
        compiler_params = pltpu.CompilerParams(dimension_semantics=("parallel",))

    out2d = pl.pallas_call(
        functools.partial(_dropout_kernel, threshold=threshold, inv_keep=inv_keep),
        out_shape=jax.ShapeDtypeStruct((rows_p, _LANE_W), x.dtype),
        grid=grid,
        in_specs=[
            pl.BlockSpec((tm, _LANE_W), lambda i: (i, 0)),   # x tile
            pl.BlockSpec((tm, _LANE_W), lambda i: (i, 0)),   # random bits tile
        ],
        out_specs=pl.BlockSpec((tm, _LANE_W), lambda i: (i, 0)),
        compiler_params=compiler_params,
    )(x2d, bits)

    return out2d.reshape(-1)[:n].reshape(orig_shape)


if __name__ == "__main__":
    key = jax.random.PRNGKey(0)
    # Small NCHW input consistent with a generic dropout module.
    x = jax.random.normal(key, (2, 4, 16, 16), dtype=jnp.float32)

    p = 0.5
    out = custom_dropout(x, p=p, seed=0, training=True)
    out = jax.block_until_ready(out)

    # Sanity checks: correct shape/dtype; kept elements equal x/(1-p), rest are 0.
    assert out.shape == x.shape and out.dtype == x.dtype
    kept = out != 0
    scaled = x / (1.0 - p)
    assert bool(jnp.allclose(jnp.where(kept, out, scaled), scaled, atol=1e-6))
    # Roughly keep_prob of the elements should survive.
    frac_kept = float(jnp.mean(kept.astype(jnp.float32)))
    assert 0.3 < frac_kept < 0.7

    # Eval mode is identity.
    out_eval = jax.block_until_ready(custom_dropout(x, p=p, training=False))
    assert bool(jnp.array_equal(out_eval, x))

    print("KERNEL_OK")
</pallas_src>

<mosaic_0001>
module attributes {stable_mosaic.version = 11 : i64} {
  func.func @_dropout_kernel(%arg0: i32, %arg1: memref<16x1024xf32, #tpu.memory_space<vmem>>, %arg2: memref<16x1024xi32, #tpu.memory_space<vmem>>, %arg3: memref<16x1024xf32, #tpu.memory_space<vmem>>) attributes {dimension_semantics = [#tpu.dimension_semantics<arbitrary>], iteration_bounds = array<i64: 1>, scalar_prefetch = 0 : i64, scratch_operands = 0 : i64, tpu.core_type = #tpu.core_type<tc>, window_params = [{transform_indices = @transform_0, window_bounds = array<i64: 16, 1024>}, {transform_indices = @transform_1, window_bounds = array<i64: 16, 1024>}, {transform_indices = @transform_2, window_bounds = array<i64: 16, 1024>}]} {
    %c0 = arith.constant 0 : index
    %c0_0 = arith.constant 0 : index
    %0 = vector.load %arg2[%c0, %c0_0] : memref<16x1024xi32, #tpu.memory_space<vmem>>, vector<16x1024xi32>
    %c-2147483648_i32 = arith.constant -2147483648 : i32
    %1 = vector.broadcast %c-2147483648_i32 : i32 to vector<16x1024xi32>
    %2 = arith.cmpi ult, %0, %1 : vector<16x1024xi32>
    %c0_1 = arith.constant 0 : index
    %c0_2 = arith.constant 0 : index
    %3 = vector.load %arg1[%c0_1, %c0_2] : memref<16x1024xf32, #tpu.memory_space<vmem>>, vector<16x1024xf32>
    %cst = arith.constant 2.000000e+00 : f32
    %4 = vector.broadcast %cst : f32 to vector<16x1024xf32>
    %5 = arith.mulf %3, %4 : vector<16x1024xf32>
    %cst_3 = arith.constant 0.000000e+00 : f32
    %6 = vector.broadcast %cst_3 : f32 to vector<16x1024xf32>
    %7 = arith.select %2, %5, %6 : vector<16x1024xi1>, vector<16x1024xf32>
    %c0_4 = arith.constant 0 : index
    %c0_5 = arith.constant 0 : index
    %8 = vector.load %arg3[%c0_4, %c0_5] : memref<16x1024xf32, #tpu.memory_space<vmem>>, vector<16x1024xf32>
    tpu.vector_store %arg3[%c0_4, %c0_5], %7 {strides = array<i32>} : memref<16x1024xf32, #tpu.memory_space<vmem>>, vector<16x1024xf32>,
    return
  }
  func.func @transform_0(%arg0: i32) -> (i32, i32) {
    %c0_i32 = arith.constant 0 : i32
    %c0_i32_0 = arith.constant 0 : i32
    return %arg0, %c0_i32 : i32, i32
  }
  func.func @transform_1(%arg0: i32) -> (i32, i32) {
    %c0_i32 = arith.constant 0 : i32
    %c0_i32_0 = arith.constant 0 : i32
    return %arg0, %c0_i32 : i32, i32
  }
  func.func @transform_2(%arg0: i32) -> (i32, i32) {
    %c0_i32 = arith.constant 0 : i32
    %c0_i32_0 = arith.constant 0 : i32
    return %arg0, %c0_i32 : i32, i32
  }
}

</mosaic_0001>

<bundles_post_ra>
// kernel: tpu_custom_call.1
= control target key start
LH: loop header
LB: loop body
LE: loop exit
PB: predicated region body
PF: predicated region fallthrough
CT: control target
= control target key end

     0   :  { %7 = vsyncpa [#allocation3], 0  ;;  %s272_s0 = inlined_call_operand.hbm [shape: f32[16,1024], index: 0, kind: input, shape index: {}]   ;;  %s273_s1 = inlined_call_operand.hbm [shape: u32[16,1024], index: 1, kind: input, shape index: {}]   ;;  %s274_s2 = inlined_call_operand.hbm [shape: f32[16,1024], index: 2, kind: output, shape index: {}]  }
   0x1   :  { %8 = vsyncpa [#allocation6], 0 }
   0x2   :  { %9 = vsyncpa [#allocation4], 0  ;;  %s225_s9 = smov [#allocation2]  }
   0x3   :  { %s15_s10 = sshll.u32 %s225_s9, 4  ;;  %s16_s10 = int_to_ptr.vmem [resolvable:$true] %s15_s10 }
   0x4   :  { %s167_s11 = scalar_lea.vmem %s16_s10, 2048  ;;  %p172_p1 = scmp.lt.s32.totalorder %s16_s10, %s16_s10 }
   0x5   :  { %p168_p0 = scmp.ne.s32.totalorder %s16_s10, %s167_s11  ;;  %p173_p2 = scmp.lt.s32.totalorder %s167_s11, %s167_s11 }
   0x7   :  { %p174_p3 = por %p173_p2, %p172_p1 }
   0x9   :  { %p175_p4 = pnand %p174_p3, %p168_p0 }
   0xb   :  { %178 = shalt.err (!%p175_p4)
}
   0xc   :  { %s226_s12 = smov 1024   ;;  %s227_s13 = smov 64  }
   0xd   :  { %21 = dma.hbm_to_vmem [thread:$0]  %s272_s0, 2048, %s16_s10, [#allocation3], %s226_s12, %s226_s12, %s227_s13  }
   0xe   :  { %s228_s16 = smov [#allocation5]  }
   0xf   :  { %s27_s17 = sshll.u32 %s228_s16, 4  ;;  %s28_s17 = int_to_ptr.vmem [resolvable:$true] %s27_s17 }
  0x10   :  { %s187_s18 = scalar_lea.vmem %s28_s17, 2048  ;;  %p192_p6 = scmp.lt.s32.totalorder %s28_s17, %s28_s17 }
  0x11   :  { %p188_p5 = scmp.ne.s32.totalorder %s28_s17, %s187_s18  ;;  %p193_p7 = scmp.lt.s32.totalorder %s187_s18, %s187_s18 }
  0x13   :  { %p194_p8 = por %p193_p7, %p192_p6 }
  0x15   :  { %p195_p9 = pnand %p194_p8, %p188_p5 }
  0x17   :  { %198 = shalt.err (!%p195_p9)
}
  0x18   :  { %33 = dma.hbm_to_vmem [thread:$0]  %s273_s1, 2048, %s28_s17, [#allocation6], %s226_s12, %s226_s12, %s227_s13  }
  0x19   :  { %219 = dma.done.wait [#allocation3], 2048  }
  0x1a   :  { %220 = vsyncadd [#allocation3], 4294965248 }
  0x1b   :  { %221 = dma.done.wait [#allocation6], 2048  }
  0x1c   :  { %222 = vsyncadd [#allocation6], 4294965248  ;;  %v40_v0 = vld [vmem:[#allocation5] sm:$0xff]  ;;  %v41_v2 = vld [vmem:[#allocation5 + $0x8] sm:$0xff]  ;;  %s229_s0 = smov [#allocation7]  }
  0x1d   :  { %v72_v1 = vld [vmem:[#allocation2] sm:$0xff]  ;;  %s257_s21 = sshll.u32 %s229_s0, 4  ;;  %vm56_vm0 = vcmp.lt.u32.totalorder %v40_v0, 2147483648  ;;  %vm57_vm1 = vcmp.lt.u32.totalorder %v41_v2, 2147483648  ;;  %v73_v4 = vld [vmem:[#allocation2 + $0x8] sm:$0xff]  ;;  %v42_v5 = vld [vmem:[#allocation5 + $0x10] sm:$0xff]  ;;  %s142_s21 = int_to_ptr.vmem [resolvable:$true] %s257_s21 }
  0x1e   :  { %v88_v3 = vmul.f32 2.0, %v72_v1  ;;  %v74_v6 = vld [vmem:[#allocation2 + $0x10] sm:$0xff]  ;;  %v89_v7 = vmul.f32 2.0, %v73_v4  ;;  %vm58_vm2 = vcmp.lt.u32.totalorder %v42_v5, 2147483648  ;;  %v43_v9 = vld [vmem:[#allocation5 + $0x18] sm:$0xff]  ;;  %v44_v11 = vld [vmem:[#allocation5 + $0x20] sm:$0xff]  ;;  %p204_p11 = scmp.lt.s32.totalorder %s142_s21, %s142_s21 }
  0x1f   :  { %v90_v8 = vmul.f32 2.0, %v74_v6  ;;  %v75_v10 = vld [vmem:[#allocation2 + $0x18] sm:$0xff]  ;;  %vm59_vm3 = vcmp.lt.u32.totalorder %v43_v9, 2147483648  ;;  %vm60_vm4 = vcmp.lt.u32.totalorder %v44_v11, 2147483648  ;;  %v76_v14 = vld [vmem:[#allocation2 + $0x20] sm:$0xff]  ;;  %v45_v15 = vld [vmem:[#allocation5 + $0x28] sm:$0xff] }
  0x20   :  { %v104_v12 = vsel %vm56_vm0, %v88_v3, 0.0  ;;  %v91_v13 = vmul.f32 2.0, %v75_v10  ;;  %v105_v16 = vsel %vm57_vm1, %v89_v7, 0.0  ;;  %v92_v18 = vmul.f32 2.0, %v76_v14  ;;  %v77_v19 = vld [vmem:[#allocation2 + $0x28] sm:$0xff]  ;;  %v46_v20 = vld [vmem:[#allocation5 + $0x30] sm:$0xff] }
  0x21   :  { %120 = vst [vmem:[#allocation7] sm:$0xff] %v104_v12  ;;  %v106_v17 = vsel %vm58_vm2, %v90_v8, 0.0  ;;  %vm61_vm5 = vcmp.lt.u32.totalorder %v45_v15, 2147483648  ;;  %121 = vst [vmem:[#allocation7 + $0x8] sm:$0xff] %v105_v16  ;;  %v93_v22 = vmul.f32 2.0, %v77_v19  ;;  %vm62_vm6 = vcmp.lt.u32.totalorder %v46_v20, 2147483648 }
  0x22   :  { %122 = vst [vmem:[#allocation7 + $0x10] sm:$0xff] %v106_v17  ;;  %v107_v21 = vsel %vm59_vm3, %v91_v13, 0.0  ;;  %v78_v23 = vld [vmem:[#allocation2 + $0x30] sm:$0xff]  ;;  %v47_v24 = vld [vmem:[#allocation5 + $0x38] sm:$0xff]  ;;  %v108_v26 = vsel %vm60_vm4, %v92_v18, 0.0  ;;  %v48_v29 = vld [vmem:[#allocation5 + $0x40] sm:$0xff] }
  0x23   :  { %v79_v25 = vld [vmem:[#allocation2 + $0x38] sm:$0xff]  ;;  %123 = vst [vmem:[#allocation7 + $0x18] sm:$0xff] %v107_v21  ;;  %v94_v27 = vmul.f32 2.0, %v78_v23  ;;  %vm63_vm7 = vcmp.lt.u32.totalorder %v47_v24, 2147483648  ;;  %v80_v30 = vld [vmem:[#allocation2 + $0x40] sm:$0xff]  ;;  %124 = vst [vmem:[#allocation7 + $0x20] sm:$0xff] %v108_v26 }
  0x24   :  { %v95_v28 = vmul.f32 2.0, %v79_v25  ;;  %v109_v31 = vsel %vm61_vm5, %v93_v22, 0.0  ;;  %vm64_vm8 = vcmp.lt.u32.totalorder %v48_v29, 2147483648  ;;  %v96_v32 = vmul.f32 2.0, %v80_v30  ;;  %v49_v33 = vld [vmem:[#allocation5 + $0x48] sm:$0xff]  ;;  %v50_v35 = vld [vmem:[#allocation5 + $0x50] sm:$0xff] }
  0x25   :  { %v81_v34 = vld [vmem:[#allocation2 + $0x48] sm:$0xff]  ;;  %125 = vst [vmem:[#allocation7 + $0x28] sm:$0xff] %v109_v31  ;;  %v110_v36 = vsel %vm62_vm6, %v94_v27, 0.0  ;;  %vm65_vm9 = vcmp.lt.u32.totalorder %v49_v33, 2147483648  ;;  %v82_v39 = vld [vmem:[#allocation2 + $0x50] sm:$0xff]  ;;  %v51_v40 = vld [vmem:[#allocation5 + $0x58] sm:$0xff] }
  0x26   :  { %v111_v37 = vsel %vm63_vm7, %v95_v28, 0.0  ;;  %v97_v38 = vmul.f32 2.0, %v81_v34  ;;  %126 = vst [vmem:[#allocation7 + $0x30] sm:$0xff] %v110_v36  ;;  %v112_v41 = vsel %vm64_vm8, %v96_v32, 0.0  ;;  %vm66_vm10 = vcmp.lt.u32.totalorder %v50_v35, 2147483648  ;;  %v83_v43 = vld [vmem:[#allocation2 + $0x58] sm:$0xff] }
  0x27   :  { %127 = vst [vmem:[#allocation7 + $0x38] sm:$0xff] %v111_v37  ;;  %v98_v42 = vmul.f32 2.0, %v82_v39  ;;  %vm67_vm11 = vcmp.lt.u32.totalorder %v51_v40, 2147483648  ;;  %v52_v44 = vld [vmem:[#allocation5 + $0x60] sm:$0xff]  ;;  %128 = vst [vmem:[#allocation7 + $0x40] sm:$0xff] %v112_v41  ;;  %v99_v46 = vmul.f32 2.0, %v83_v43 }
  0x28   :  { %v113_v45 = vsel %vm65_vm9, %v97_v38, 0.0  ;;  %vm68_vm12 = vcmp.lt.u32.totalorder %v52_v44, 2147483648  ;;  %v84_v47 = vld [vmem:[#allocation2 + $0x60] sm:$0xff]  ;;  %v53_v48 = vld [vmem:[#allocation5 + $0x68] sm:$0xff]  ;;  %v54_v53 = vld [vmem:[#allocation5 + $0x70] sm:$0xff]  ;;  %s199_s1 = scalar_lea.vmem %s142_s21, 2048 }
  0x29   :  { %v85_v49 = vld [vmem:[#allocation2 + $0x68] sm:$0xff]  ;;  %129 = vst [vmem:[#allocation7 + $0x48] sm:$0xff] %v113_v45  ;;  %v114_v50 = vsel %vm66_vm10, %v98_v42, 0.0  ;;  %v100_v51 = vmul.f32 2.0, %v84_v47  ;;  %vm69_vm13 = vcmp.lt.u32.totalorder %v53_v48, 2147483648  ;;  %v86_v54 = vld [vmem:[#allocation2 + $0x70] sm:$0xff]  ;;  %p200_p10 = scmp.ne.s32.totalorder %s142_s21, %s199_s1  ;;  %p205_p12 = scmp.lt.s32.totalorder %s199_s1, %s199_s1 }
  0x2a   :  { %v101_v52 = vmul.f32 2.0, %v85_v49  ;;  %130 = vst [vmem:[#allocation7 + $0x50] sm:$0xff] %v114_v50  ;;  %v115_v55 = vsel %vm67_vm11, %v99_v46, 0.0  ;;  %vm70_vm14 = vcmp.lt.u32.totalorder %v54_v53, 2147483648  ;;  %v102_v56 = vmul.f32 2.0, %v86_v54  ;;  %v55_v57 = vld [vmem:[#allocation5 + $0x78] sm:$0xff] }
  0x2b   :  { %v87_v58 = vld [vmem:[#allocation2 + $0x78] sm:$0xff]  ;;  %131 = vst [vmem:[#allocation7 + $0x58] sm:$0xff] %v115_v55  ;;  %v116_v59 = vsel %vm68_vm12, %v100_v51, 0.0  ;;  %vm71_vm15 = vcmp.lt.u32.totalorder %v55_v57, 2147483648  ;;  %p206_p13 = por %p205_p12, %p204_p11 }
  0x2c   :  { %v117_v60 = vsel %vm69_vm13, %v101_v52, 0.0  ;;  %v103_v61 = vmul.f32 2.0, %v87_v58  ;;  %132 = vst [vmem:[#allocation7 + $0x60] sm:$0xff] %v116_v59  ;;  %v118_v62 = vsel %vm70_vm14, %v102_v56, 0.0 }
  0x2d   :  { %133 = vst [vmem:[#allocation7 + $0x68] sm:$0xff] %v117_v60  ;;  %134 = vst [vmem:[#allocation7 + $0x70] sm:$0xff] %v118_v62  ;;  %p207_p0 = pnand %p206_p13, %p200_p10 }
  0x2e   :  { %v119_v63 = vsel %vm71_vm15, %v103_v61, 0.0 }
  0x2f   :  { %135 = vst [vmem:[#allocation7 + $0x78] sm:$0xff] %v119_v63 }
  0x30   :  { %210 = shalt.err (!%p207_p0)
}
  0x31   :  { %147 = dma.vmem_to_hbm [thread:$0]  %s142_s21, 2048, %s274_s2, [#allocation4], %s226_s12, %s226_s12, %s227_s13  }
  0x32   :  { %223 = dma.done.wait [#allocation4], 2048  }
  0x33   :  { %224 = vsyncadd [#allocation4], 4294965248 }
  0x34   :  { %151 = vsyncpa [#allocation3], 1 }
  0x35   :  { %152 = vsyncpa [#allocation6], 1 }
  0x36   :  { %153 = vsyncpa [#allocation4], 1 }

</bundles_post_ra>
